<compile_context>
chip_gen: v5e
topology: v5e:2x2
jax: 0.10.0
libtpu: 0.0.40
codegen_flags: <defaults>
</compile_context>

<pallas_src>
import functools
import math

import jax
import jax.numpy as jnp
from jax.experimental import pallas as pl
from jax.experimental.pallas import tpu as pltpu

# ------------------------- config (matches CouplingLayerConfig) --------------
INPUT_DIM = 16
HIDDEN_DIM = 32
NUM_BINS = 8
EPS = 1e-6
SPLIT_DIM = INPUT_DIM // 2                               # 8
REMAINING_DIM = INPUT_DIM - SPLIT_DIM                    # 8
SPLINE_PARAMS_DIM = REMAINING_DIM * (3 * NUM_BINS + 1)   # 8 * 25 = 200

LANES = 128
SAMPLES_PER_ROW = LANES // INPUT_DIM                     # 8 samples per 128-lane row


def _round_up(n, m):
    return ((n + m - 1) // m) * m


# ----------------------------- fast (default) path ---------------------------
def identity_spline_kernel(x_ref, y_ref):
    """Fused split -> identity rational-quadratic spline -> combine.

    The reference _rational_quadratic_spline is the identity with zero
    log-det, so the fused forward is a copy.  The wrapper presents x as a
    lane-dense (rows, 128) slab (free bitcast reshape of (B, 16)), so loads
    and stores are full-width and each grid step moves megabytes.
    """
    y_ref[...] = x_ref[...]


# ------------------------ scaffold path (flag-guarded) -----------------------
def coupling_scaffold_kernel(x_ref, w1_ref, b1_ref, w2_ref, b2_ref, w3_ref, b3_ref,
                             y_ref, ld_ref):
    """CouplingNetwork MLP + identity spline, batch-major.

    Only used when network params are passed explicitly: the reference spline
    ignores the network output, so running the MLP has no effect on y/log_det.
    Kept (behind the flag, not behind DCE) as the plug-in point for a real RQS.
    """
    x = x_ref[...]                                   # (bt, INPUT_DIM)
    x1 = x[:, :SPLIT_DIM]                            # (bt, SPLIT_DIM)

    h = jnp.dot(x1, w1_ref[...], preferred_element_type=jnp.float32) + b1_ref[...]
    h = jnp.maximum(h, 0.0)
    h = jnp.dot(h, w2_ref[...], preferred_element_type=jnp.float32) + b2_ref[...]
    h = jnp.maximum(h, 0.0)
    params = jnp.dot(h, w3_ref[...], preferred_element_type=jnp.float32) + b3_ref[...]
    # TODO(synk): a real rational-quadratic spline would parse `params` into
    # widths / heights / derivatives (vectorized softmax and softplus+EPS over
    # contiguous slabs, bf16 MXU inputs), transform x[:, SPLIT_DIM:], and emit
    # a nonzero per-sample log-det.  The reference spline is the identity, so
    # the parameters are intentionally unused here.
    del params

    y_ref[...] = x                                   # identity spline + combine
    ld_ref[...] = jnp.zeros_like(ld_ref)             # sum of zero per-feature log-dets


# --------------------------------- wrapper -----------------------------------
@functools.partial(jax.jit, static_argnames=("row_tile_max", "batch_tile"))
def neural_spline_coupling_forward(x, params=None, *, row_tile_max=4096, batch_tile=128):
    """Forward pass of NeuralSplineCouplingLayer.

    x      : (B, INPUT_DIM) float32.
    params : None (default, fast path) or a tuple (w1, b1, w2, b2, w3, b3) in
             PyTorch nn.Linear layout ((out, in) weights, (out,) biases) to
             also run the CouplingNetwork scaffold.
    Returns (y, log_det): y == x, log_det == zeros(B)  (identity spline).
    """
    B = x.shape[0]

    if params is None:
        # ---- pure HBM-roofline copy: lane-dense layout, large tiles ---------
        rows = -(-B // SAMPLES_PER_ROW)              # ceil(B / 8)
        rows_p = _round_up(max(rows, 1), 8)          # sublane alignment
        bp = rows_p * SAMPLES_PER_ROW                # padded batch (multiple of 64)
        # Pad is a no-op when B % 64 == 0 (the common case); the reshape is a
        # free row-major bitcast, NOT a transpose.
        x_p = x if bp == B else jnp.pad(x, ((0, bp - B), (0, 0)))
        x2d = x_p.reshape(rows_p, LANES)

        # Tile: up to 4096 rows x 128 lanes x f32 = 2 MiB per buffer.  With
        # double-buffered input + output (~8 MiB) this stays inside v5e's
        # 16 MiB scoped VMEM default and has ample headroom on v6e/v7x.
        row_tile = min(row_tile_max, rows_p)
        grid = (pl.cdiv(rows_p, row_tile),)

        y2d = pl.pallas_call(
            identity_spline_kernel,
            out_shape=jax.ShapeDtypeStruct((rows_p, LANES), jnp.float32),
            grid=grid,
            in_specs=[pl.BlockSpec((row_tile, LANES), lambda i: (i, 0))],
            out_specs=pl.BlockSpec((row_tile, LANES), lambda i: (i, 0)),
            compiler_params=pltpu.CompilerParams(
                dimension_semantics=("parallel",)),          # 2 TCs on v7x
            cost_estimate=pl.CostEstimate(
                flops=0, transcendentals=0,
                bytes_accessed=2 * rows_p * LANES * 4),
        )(x2d)

        y = y2d.reshape(bp, INPUT_DIM)[:B]
        # TODO(synk): when a real RQS replaces the identity stub, log_det
        # becomes data-dependent and moves back into the kernel as an output;
        # with the identity spline it is identically zero.
        log_det = jnp.zeros((B,), jnp.float32)
        return y, log_det

    # ---- scaffold path: also run the CouplingNetwork MLP --------------------
    w1, b1, w2, b2, w3, b3 = params
    bt = batch_tile
    bp = _round_up(B, bt)
    x_p = x if bp == B else jnp.pad(x, ((0, bp - B), (0, 0)))

    # Pre-transpose the tiny weights once so kernel matmuls are
    # (batch, in) @ (in, out) with the batch tile as the MXU M dimension.
    w1t = w1.T                                       # (SPLIT_DIM, HIDDEN_DIM)
    w2t = w2.T                                       # (HIDDEN_DIM, HIDDEN_DIM)
    w3t = w3.T                                       # (HIDDEN_DIM, SPLINE_PARAMS_DIM)
    b1r = b1.reshape(1, HIDDEN_DIM)
    b2r = b2.reshape(1, HIDDEN_DIM)
    b3r = b3.reshape(1, SPLINE_PARAMS_DIM)

    flops = 2 * bp * (SPLIT_DIM * HIDDEN_DIM
                      + HIDDEN_DIM * HIDDEN_DIM
                      + HIDDEN_DIM * SPLINE_PARAMS_DIM)
    bytes_accessed = 4 * (2 * bp * INPUT_DIM + bp
                          + HIDDEN_DIM * (SPLIT_DIM + HIDDEN_DIM + SPLINE_PARAMS_DIM)
                          + 2 * HIDDEN_DIM + SPLINE_PARAMS_DIM)

    y_p, ld_p = pl.pallas_call(
        coupling_scaffold_kernel,
        out_shape=(jax.ShapeDtypeStruct((bp, INPUT_DIM), jnp.float32),
                   jax.ShapeDtypeStruct((bp, 1), jnp.float32)),
        grid=(bp // bt,),
        in_specs=[
            pl.BlockSpec((bt, INPUT_DIM), lambda i: (i, 0)),               # x
            pl.BlockSpec((SPLIT_DIM, HIDDEN_DIM), lambda i: (0, 0)),       # w1^T (resident)
            pl.BlockSpec((1, HIDDEN_DIM), lambda i: (0, 0)),               # b1
            pl.BlockSpec((HIDDEN_DIM, HIDDEN_DIM), lambda i: (0, 0)),      # w2^T
            pl.BlockSpec((1, HIDDEN_DIM), lambda i: (0, 0)),               # b2
            pl.BlockSpec((HIDDEN_DIM, SPLINE_PARAMS_DIM), lambda i: (0, 0)),  # w3^T
            pl.BlockSpec((1, SPLINE_PARAMS_DIM), lambda i: (0, 0)),        # b3
        ],
        out_specs=(pl.BlockSpec((bt, INPUT_DIM), lambda i: (i, 0)),        # y
                   pl.BlockSpec((bt, 1), lambda i: (i, 0))),               # log_det
        compiler_params=pltpu.CompilerParams(
            dimension_semantics=("parallel",)),
        cost_estimate=pl.CostEstimate(
            flops=flops, transcendentals=0, bytes_accessed=bytes_accessed),
    )(x_p, w1t, b1r, w2t, b2r, w3t, b3r)

    return y_p[:B], ld_p[:B, 0]


def _xavier_uniform(key, fan_in, fan_out):
    # PyTorch Linear layout: (out_features, in_features)
    a = math.sqrt(6.0 / (fan_in + fan_out))
    return jax.random.uniform(key, (fan_out, fan_in), jnp.float32, minval=-a, maxval=a)


if __name__ == "__main__":
    BATCH = 8
    key = jax.random.PRNGKey(0)
    kx, k1, k2 = jax.random.split(key, 3)

    x = jax.random.normal(kx, (BATCH, INPUT_DIM), jnp.float32)

    # ---- default fast path: no network operands, pure copy ------------------
    y, log_det = jax.block_until_ready(neural_spline_coupling_forward(x))
    assert y.shape == (BATCH, INPUT_DIM) and log_det.shape == (BATCH,)
    assert jnp.allclose(y, x, atol=1e-6)
    assert jnp.allclose(log_det, jnp.zeros((BATCH,), jnp.float32), atol=1e-6)

    # ---- scaffold path: CouplingNetwork params, matching _init_weights ------
    #   Linear(8->32), Linear(32->32): xavier_uniform, zero bias
    #   Linear(32->200): zero weight, zero bias
    w1 = _xavier_uniform(k1, SPLIT_DIM, HIDDEN_DIM)           # (32, 8)
    b1 = jnp.zeros((HIDDEN_DIM,), jnp.float32)
    w2 = _xavier_uniform(k2, HIDDEN_DIM, HIDDEN_DIM)          # (32, 32)
    b2 = jnp.zeros((HIDDEN_DIM,), jnp.float32)
    w3 = jnp.zeros((SPLINE_PARAMS_DIM, HIDDEN_DIM), jnp.float32)  # (200, 32)
    b3 = jnp.zeros((SPLINE_PARAMS_DIM,), jnp.float32)

    y2, log_det2 = jax.block_until_ready(
        neural_spline_coupling_forward(x, (w1, b1, w2, b2, w3, b3)))
    assert y2.shape == (BATCH, INPUT_DIM) and log_det2.shape == (BATCH,)
    assert jnp.allclose(y2, x, atol=1e-6)
    assert jnp.allclose(log_det2, jnp.zeros((BATCH,), jnp.float32), atol=1e-6)

    print("KERNEL_OK")
</pallas_src>

<mosaic_0001>
module attributes {stable_mosaic.version = 11 : i64} {
  func.func @identity_spline_kernel(%arg0: i32, %arg1: memref<8x128xf32, #tpu.memory_space<vmem>>, %arg2: memref<8x128xf32, #tpu.memory_space<vmem>>) attributes {dimension_semantics = [#tpu.dimension_semantics<parallel>], iteration_bounds = array<i64: 1>, scalar_prefetch = 0 : i64, scratch_operands = 0 : i64, tpu.core_type = #tpu.core_type<tc>, window_params = [{transform_indices = @transform_0, window_bounds = array<i64: 8, 128>}, {transform_indices = @transform_1, window_bounds = array<i64: 8, 128>}]} {
    %c0 = arith.constant 0 : index
    %c0_0 = arith.constant 0 : index
    %0 = vector.load %arg1[%c0, %c0_0] : memref<8x128xf32, #tpu.memory_space<vmem>>, vector<8x128xf32>
    %c0_1 = arith.constant 0 : index
    %c0_2 = arith.constant 0 : index
    %1 = vector.load %arg2[%c0_1, %c0_2] : memref<8x128xf32, #tpu.memory_space<vmem>>, vector<8x128xf32>
    tpu.vector_store %arg2[%c0_1, %c0_2], %0 {strides = array<i32>} : memref<8x128xf32, #tpu.memory_space<vmem>>, vector<8x128xf32>,
    return
  }
  func.func @transform_0(%arg0: i32) -> (i32, i32) {
    %c0_i32 = arith.constant 0 : i32
    %c0_i32_0 = arith.constant 0 : i32
    return %arg0, %c0_i32 : i32, i32
  }
  func.func @transform_1(%arg0: i32) -> (i32, i32) {
    %c0_i32 = arith.constant 0 : i32
    %c0_i32_0 = arith.constant 0 : i32
    return %arg0, %c0_i32 : i32, i32
  }
}

</mosaic_0001>

<bundles_post_ra>
// kernel: neural_spline_coupling_forward.1
= control target key start
LH: loop header
LB: loop body
LE: loop exit
PB: predicated region body
PF: predicated region fallthrough
CT: control target
= control target key end

     0   :  { %s30_s0 = inlined_call_operand.vmem [shape: f32[8,128], index: 0, kind: input, shape index: {}]   ;;  %s31_s1 = inlined_call_operand.vmem [shape: f32[8,128], index: 1, kind: output, shape index: {}]  }
   0x1   :  { %v8_v0 = vld [vmem:[%s30_s0] sm:$0xff] }
   0x2   :  { %9 = vst [vmem:[%s31_s1] sm:$0xff] %v8_v0 }

</bundles_post_ra>
